<compile_context>
chip_gen: v7x
topology: tpu7x:2x2x1
jax: 0.10.0
libtpu: 0.0.40
codegen_flags: <defaults>
</compile_context>

<pallas_src>
import jax
import jax.numpy as jnp
from jax.experimental import pallas as pl
from jax.experimental.pallas import tpu as pltpu


def _round_up(x, m):
    return ((x + m - 1) // m) * m


def _ffn_output_kernel(h_ref, res_ref, wt_ref, gamma_ref, bfold_ref, out_ref):
    # h_ref:     (TM, K)  hidden-states tile
    # res_ref:   (TM, N)  residual tile
    # wt_ref:    (K,  N)  dense weight, pre-transposed, resident across grid
    # gamma_ref: (1,  N)  NoNorm weight
    # bfold_ref: (1,  N)  folded bias:  dense_bias * gamma + beta
    # out_ref:   (TM, N)
    y = jnp.dot(h_ref[...], wt_ref[...], preferred_element_type=jnp.float32)
    y = (y + res_ref[...].astype(jnp.float32)) * gamma_ref[...] + bfold_ref[...]
    out_ref[...] = y.astype(out_ref.dtype)


def prepare_ffn_output_params(weight, bias, nonorm_weight, nonorm_bias):
    """One-time parameter prep (hoist out of the hot path / do at load time).

    weight is torch layout (N, K); returns (K, N) transposed weight plus the
    folded epilogue vectors:  (y + b + r)*g + beta == (y + r)*g + (b*g + beta).
    """
    n = weight.shape[0]
    w_t = jnp.asarray(weight).T  # (K, N), single tiny HBM transpose
    gamma = nonorm_weight.astype(jnp.float32).reshape(1, n)
    bfold = (bias.astype(jnp.float32) * nonorm_weight.astype(jnp.float32)
             + nonorm_bias.astype(jnp.float32)).reshape(1, n)
    return w_t, gamma, bfold


def ffn_output_prepared(hidden_states, residual, w_t, gamma, bfold, *, tm=512):
    """hidden_states: (B, S, K); residual: (B, S, N); w_t: (K, N) pre-transposed."""
    B, S, K = hidden_states.shape
    N = residual.shape[-1]
    M = B * S

    h2 = hidden_states.reshape(M, K)
    r2 = residual.reshape(M, N)

    # Sublane packing: 16 rows/vreg for 16-bit dtypes, 8 for 32-bit.
    sub = 16 if jnp.dtype(hidden_states.dtype).itemsize == 2 else 8

    # Effective tile: multiple of the sublane pack, capped so the grid has at
    # least 2 steps whenever M allows it (keeps v7x's second TensorCore busy).
    if M > sub:
        tm_cap = _round_up(pl.cdiv(M, 2), sub)
    else:
        tm_cap = _round_up(max(M, 1), sub)
    tm_eff = max(sub, min(tm, tm_cap))
    tm_eff = _round_up(tm_eff, sub)

    # Ragged last tile: no padding, no output slice.  OOB stores are masked;
    # OOB loads only feed rows that are never stored (row-wise computation).
    grid = (pl.cdiv(M, tm_eff),)

    out = pl.pallas_call(
        _ffn_output_kernel,
        out_shape=jax.ShapeDtypeStruct((M, N), hidden_states.dtype),
        grid_spec=pltpu.PrefetchScalarGridSpec(
            num_scalar_prefetch=0,
            grid=grid,
            in_specs=[
                pl.BlockSpec((tm_eff, K), lambda i: (i, 0)),   # hidden tile
                pl.BlockSpec((tm_eff, N), lambda i: (i, 0)),   # residual tile
                pl.BlockSpec((K, N),      lambda i: (0, 0)),   # weight^T (resident)
                pl.BlockSpec((1, N),      lambda i: (0, 0)),   # gamma
                pl.BlockSpec((1, N),      lambda i: (0, 0)),   # folded bias
            ],
            out_specs=pl.BlockSpec((tm_eff, N), lambda i: (i, 0)),
        ),
        compiler_params=pltpu.CompilerParams(
            dimension_semantics=("parallel",),
            vmem_limit_bytes=32 * 1024 * 1024,   # stay within v7x's 64 MiB phys VMEM
        ),
    )(h2, r2, w_t, gamma, bfold)

    return out.reshape(B, S, N)


def ffn_output(hidden_states, residual, weight, bias, nonorm_weight, nonorm_bias,
               *, tm=512):
    """Convenience wrapper; weight is torch layout (N, K)."""
    w_t, gamma, bfold = prepare_ffn_output_params(weight, bias, nonorm_weight,
                                                  nonorm_bias)
    return ffn_output_prepared(hidden_states, residual, w_t, gamma, bfold, tm=tm)


def ffn_output_ref(hidden_states, residual, weight, bias, nonorm_weight, nonorm_bias):
    """Pure-JAX reference matching the PyTorch forward exactly."""
    y = jnp.einsum("bsk,nk->bsn", hidden_states, weight) + bias
    y = y + residual
    return y * nonorm_weight + nonorm_bias


if __name__ == "__main__":
    # Module defaults: emb_dim=128, intermediate_size=512
    batch, seq = 2, 8
    emb_dim, intermediate_size = 128, 512

    key = jax.random.PRNGKey(0)
    k_h, k_r, k_w, k_b = jax.random.split(key, 4)

    hidden_states = jax.random.normal(k_h, (batch, seq, intermediate_size), jnp.float32)
    residual = jax.random.normal(k_r, (batch, seq, emb_dim), jnp.float32)

    # Deterministic parameter init (nn.Linear-like scale), torch layout (out, in)
    limit = 1.0 / jnp.sqrt(intermediate_size)
    dense_w = jax.random.uniform(k_w, (emb_dim, intermediate_size), jnp.float32,
                                 minval=-limit, maxval=limit)
    dense_b = jax.random.uniform(k_b, (emb_dim,), jnp.float32,
                                 minval=-limit, maxval=limit)
    # NoNorm params use non-trivial values to exercise the fused epilogue.
    nonorm_w = 1.0 + 0.1 * jnp.arange(emb_dim, dtype=jnp.float32) / emb_dim
    nonorm_b = 0.05 * jnp.ones((emb_dim,), jnp.float32)

    out = ffn_output(hidden_states, residual, dense_w, dense_b, nonorm_w, nonorm_b)
    out = jax.block_until_ready(out)
    ref = ffn_output_ref(hidden_states, residual, dense_w, dense_b, nonorm_w, nonorm_b)
    assert out.shape == (batch, seq, emb_dim)
    assert jnp.allclose(out, ref, atol=1e-4, rtol=1e-4), "mismatch vs reference"

    # Ragged-M check (M = 14, not a multiple of the 8-row tile): exercises the
    # masked OOB last tile with no wrapper padding/slicing.
    seq_r = 7
    h_r = jax.random.normal(k_h, (batch, seq_r, intermediate_size), jnp.float32)
    r_r = jax.random.normal(k_r, (batch, seq_r, emb_dim), jnp.float32)
    out_r = jax.block_until_ready(
        ffn_output(h_r, r_r, dense_w, dense_b, nonorm_w, nonorm_b))
    ref_r = ffn_output_ref(h_r, r_r, dense_w, dense_b, nonorm_w, nonorm_b)
    assert out_r.shape == (batch, seq_r, emb_dim)
    assert jnp.allclose(out_r, ref_r, atol=1e-4, rtol=1e-4), "ragged mismatch"

    print("KERNEL_OK")
</pallas_src>

<mosaic_0001>
module attributes {stable_mosaic.version = 11 : i64} {
  func.func @_ffn_output_kernel(%arg0: i32, %arg1: memref<8x512xf32, #tpu.memory_space<vmem>>, %arg2: memref<8x128xf32, #tpu.memory_space<vmem>>, %arg3: memref<512x128xf32, #tpu.memory_space<vmem>>, %arg4: memref<1x128xf32, #tpu.memory_space<vmem>>, %arg5: memref<1x128xf32, #tpu.memory_space<vmem>>, %arg6: memref<8x128xf32, #tpu.memory_space<vmem>>) attributes {dimension_semantics = [#tpu.dimension_semantics<parallel>], iteration_bounds = array<i64: 2>, scalar_prefetch = 0 : i64, scratch_operands = 0 : i64, tpu.core_type = #tpu.core_type<tc>, window_params = [{transform_indices = @transform_0, window_bounds = array<i64: 8, 512>}, {transform_indices = @transform_1, window_bounds = array<i64: 8, 128>}, {pipeline_mode = #tpu.pipeline_mode<synchronous>, transform_indices = @transform_2, window_bounds = array<i64: 512, 128>}, {pipeline_mode = #tpu.pipeline_mode<synchronous>, transform_indices = @transform_3, window_bounds = array<i64: 1, 128>}, {pipeline_mode = #tpu.pipeline_mode<synchronous>, transform_indices = @transform_4, window_bounds = array<i64: 1, 128>}, {transform_indices = @transform_5, window_bounds = array<i64: 8, 128>}]} {
    %c0 = arith.constant 0 : index
    %c0_0 = arith.constant 0 : index
    %0 = vector.load %arg1[%c0, %c0_0] : memref<8x512xf32, #tpu.memory_space<vmem>>, vector<8x512xf32>
    %c0_1 = arith.constant 0 : index
    %c0_2 = arith.constant 0 : index
    %1 = vector.load %arg3[%c0_1, %c0_2] : memref<512x128xf32, #tpu.memory_space<vmem>>, vector<512x128xf32>
    %cst = arith.constant dense<0.000000e+00> : vector<8x128xf32>
    %2 = tpu.matmul %0, %1, %cst {dimension_numbers = #tpu.dot_dimension_numbers<[1], [0], [0], [1], [0, 0, 1, 1], [], []>} : vector<8x512xf32>, vector<512x128xf32>, vector<8x128xf32> -> vector<8x128xf32>
    %c0_3 = arith.constant 0 : index
    %c0_4 = arith.constant 0 : index
    %3 = vector.load %arg2[%c0_3, %c0_4] : memref<8x128xf32, #tpu.memory_space<vmem>>, vector<8x128xf32>
    %4 = arith.addf %2, %3 : vector<8x128xf32>
    %c0_5 = arith.constant 0 : index
    %c0_6 = arith.constant 0 : index
    %5 = vector.load %arg4[%c0_5, %c0_6] : memref<1x128xf32, #tpu.memory_space<vmem>>, vector<1x128xf32>
    %6 = vector.broadcast %5 : vector<1x128xf32> to vector<8x128xf32>
    %7 = arith.mulf %4, %6 : vector<8x128xf32>
    %c0_7 = arith.constant 0 : index
    %c0_8 = arith.constant 0 : index
    %8 = vector.load %arg5[%c0_7, %c0_8] : memref<1x128xf32, #tpu.memory_space<vmem>>, vector<1x128xf32>
    %9 = vector.broadcast %8 : vector<1x128xf32> to vector<8x128xf32>
    %10 = arith.addf %7, %9 : vector<8x128xf32>
    %c0_9 = arith.constant 0 : index
    %c0_10 = arith.constant 0 : index
    %11 = vector.load %arg6[%c0_9, %c0_10] : memref<8x128xf32, #tpu.memory_space<vmem>>, vector<8x128xf32>
    tpu.vector_store %arg6[%c0_9, %c0_10], %10 {strides = array<i32>} : memref<8x128xf32, #tpu.memory_space<vmem>>, vector<8x128xf32>,
    return
  }
  func.func @transform_0(%arg0: i32) -> (i32, i32) {
    %c0_i32 = arith.constant 0 : i32
    %c0_i32_0 = arith.constant 0 : i32
    return %arg0, %c0_i32 : i32, i32
  }
  func.func @transform_1(%arg0: i32) -> (i32, i32) {
    %c0_i32 = arith.constant 0 : i32
    %c0_i32_0 = arith.constant 0 : i32
    return %arg0, %c0_i32 : i32, i32
  }
  func.func @transform_2(%arg0: i32) -> (i32, i32) {
    %c0_i32 = arith.constant 0 : i32
    %c0_i32_0 = arith.constant 0 : i32
    %c0_i32_1 = arith.constant 0 : i32
    return %c0_i32, %c0_i32_0 : i32, i32
  }
  func.func @transform_3(%arg0: i32) -> (i32, i32) {
    %c0_i32 = arith.constant 0 : i32
    %c0_i32_0 = arith.constant 0 : i32
    %c0_i32_1 = arith.constant 0 : i32
    return %c0_i32, %c0_i32_0 : i32, i32
  }
  func.func @transform_4(%arg0: i32) -> (i32, i32) {
    %c0_i32 = arith.constant 0 : i32
    %c0_i32_0 = arith.constant 0 : i32
    %c0_i32_1 = arith.constant 0 : i32
    return %c0_i32, %c0_i32_0 : i32, i32
  }
  func.func @transform_5(%arg0: i32) -> (i32, i32) {
    %c0_i32 = arith.constant 0 : i32
    %c0_i32_0 = arith.constant 0 : i32
    return %arg0, %c0_i32 : i32, i32
  }
}

</mosaic_0001>

<bundles_post_ra>
// kernel: tpu_custom_call.1
= control target key start
LH: loop header
LB: loop body
LE: loop exit
PB: predicated region body
PF: predicated region fallthrough
CT: control target
= control target key end

     0   :  { %s1307_s0 = inlined_call_operand.hbm [shape: f32[16,512], index: 0, kind: input, shape index: {}]   ;;  %s1308_s1 = inlined_call_operand.hbm [shape: f32[16,128], index: 1, kind: input, shape index: {}]   ;;  %s1309_s2 = inlined_call_operand.hbm [shape: f32[512,128], index: 2, kind: input, shape index: {}]   ;;  %s1310_s3 = inlined_call_operand.vmem [shape: f32[1,128], index: 3, kind: input, shape index: {}]   ;;  %s1311_s4 = inlined_call_operand.vmem [shape: f32[1,128], index: 4, kind: input, shape index: {}]   ;;  %s1312_s5 = inlined_call_operand.hbm [shape: f32[16,128], index: 5, kind: output, shape index: {}]  }
   0x1   :  { %1317 = sst [smem:[#allocation13_spill]] %s1307_s0 }
   0x2   :  { %10 = vsyncpa [#allocation3], 0 }
   0x3   :  { %12 = vsyncpa [#allocation3 + $0x1], 0 }
   0x4   :  { %13 = vsyncpa [#allocation6], 0 }
   0x5   :  { %15 = vsyncpa [#allocation6 + $0x1], 0 }
   0x6   :  { %16 = vsyncpa [#allocation4], 0 }
   0x7   :  { %18 = vsyncpa [#allocation4 + $0x1], 0  ;;  %s1053_s18 = smov 0   ;;  %s1055_s19 = smov 0  }
   0x8   :  { %s1057_s20 = smov 0   ;;  %s1059_s21 = smov 0  }
   0x9 LB: > { %s1074_s22 = sadd.s32 4294967295, %s1015_s21   ;;  %s634_s23 = sadd.s32 4294967294, %s1015_s21   ;;  %s1015_s21 = sphi %s1059_s21, %s1336_s21   ;;  %s1011_s20 = sphi %s1057_s20, %s1335_s20   ;;  %s1007_s19 = sphi %s1055_s19, %s1334_s19   ;;  %s1003_s18 = sphi %s1053_s18, %s1333_s18  }
   0xa   : > { %p44_p0 = scmp.ne.s32.totalorder %s1007_s19, %s1003_s18  ;;  %p1313_p1 = scmp.eq.s32.totalorder %s1074_s22, 0 }
   0xb   : > { %p163_p3 = scmp.eq.s32.totalorder %s634_s23, 1  ;;  %p635_p5 = scmp.ge.s32.totalorder %s1015_s21, 1 }
   0xc   : > { %p1083_p4 = por %p1313_p1, %p44_p0  ;;  %p170_p7 = scmp.lt.s32.totalorder %s1015_s21, 3 }
   0xd   : > { %p1088_p6 = por %p163_p3, %p44_p0  ;;  %s1017_s27 = smov [#allocation7]  }
   0xe   : > { %s1318_s24 = scalar_select %p1083_p4, 1, 0 }
   0xf   : > { %s1319_s25 = scalar_select %p1088_p6, 1, 0 }
  0x10   : > { %p1093_p8 = pnand %p635_p5, %p170_p7  ;;  %s182_s28 = sshll.u32 %s1017_s27, 4  ;;  %s1097_s28 = int_to_ptr.vmem [resolvable:$true] %s182_s28 }
  0x11   : > { %s1109_s30 = sadd.s32 1, %s1015_s21   ;;  %s31_s6 = sadd.s32 1, %s1011_s20 }
  0x12   : > { %s1320_s26 = scalar_select %p1093_p8, 1, 0 }
  0x13   : > { %p799_p9 = pneg %p1093_p8  ;;  %s28_s7 = ssub.s32 %s1015_s21, %s1109_s30 }
  0x14   : > { %s853_s10 = scalar_lea.hbm %s1309_s2, 8192 }
  0x15   : > { %p1104_p11 = pnand %p799_p9, %p1313_p1  ;;  %p854_p12 = scmp.ne.s32.totalorder %s1309_s2, %s853_s10 }
  0x16   : > { %p860_p5 = scmp.lt.u32.totalorder %s853_s10, %s1309_s2 }
  0x17   : > { %p855_p13 = pneg %p1104_p11 }
  0x19   : > { %p856_p0 = pnand %p855_p13, %p854_p12 }
  0x1b   : > { %p857_p3 = pneg %p856_p0 }
  0x1d   : > { %p862_p7 = pnand %p860_p5, %p857_p3 }
  0x1f   : > { %865 = shalt.err (!%p862_p7)
}
  0x20   : > { %s866_s15 = scalar_lea.vmem %s1097_s28, 8192  ;;  %p874_p2 = scmp.lt.s32.totalorder %s1097_s28, %s1097_s28 }
  0x21   : > { %p867_p9 = scmp.ne.s32.totalorder %s1097_s28, %s866_s15  ;;  %p875_p6 = scmp.lt.s32.totalorder %s866_s15, %s866_s15 }
  0x23   : > { %p869_p10 = pnand %p867_p9, %p855_p13  ;;  %p876_p4 = por %p875_p6, %p874_p2 }
  0x25   : > { %p870_p1 = pneg %p869_p10 }
  0x27   : > { %p877_p8 = pnand %p876_p4, %p870_p1 }
  0x29   : > { %880 = shalt.err (!%p877_p8)
}
  0x2a   : > { %s1018_s16 = smov 128   ;;  %s1019_s17 = smov 8  }
  0x2b   : > { %802 = dma.hbm_to_vmem [thread:$0]  (!%p1104_p11), %s1309_s2, 8192, %s1097_s28, [#allocation6], %s1018_s16, %s1018_s16, %s1019_s17  }
  0x2c   : > { %p29_p1 = scmp.eq.s32.totalorder %s28_s7, 0  ;;  %p38_p2 = scmp.ne.s32.totalorder %s1011_s20, %s1007_s19 }
  0x2d   : > { %p39_p4 = scmp.eq.s32.totalorder %s1015_s21, 0  ;;  %p815_p6 = scmp.lt.s32.totalorder %s1015_s21, 2 }
  0x2e   : > { %s1140_s8 = scalar_select %p29_p1, %s1011_s20, %s31_s6  }
  0x2f   : > { %p40_p8 = por %p39_p4, %p38_p2  ;;  %p1322_p10 = scmp.eq.s32.totalorder %s1074_s22, 1 }
  0x30   : > { %s1149_s10 = sand.u32 1, %s1011_s20   ;;  %s654_s29 = sshll.u32 %s1015_s21, 9 }
  0x31   : > { %p1144_p12 = por %p1322_p10, %p38_p2  ;;  %s638_s11 = sshll.u32 %s1149_s10, 5 }
  0x32   : > { %s1324_s0 = sld [smem:[#allocation13_spill]]  ;;  %s206_s6 = scalar_lea.vmem [#allocation2], %s638_s11 }
  0x33   : > { %s1323_s9 = scalar_select %p1144_p12, 1, 0 }
  0x34   : > { %s214_s13 = sshll.u32 %s206_s6, 4  ;;  %p1158_p11 = pnand %p815_p6, %p40_p8  ;;  %s1162_s13 = int_to_ptr.vmem [resolvable:$true] %s214_s13 }
  0x35   : > { %s221_s15 = sand.u32 1, %s1015_s21   ;;  %s203_s16 = scalar_lea.sflag [#allocation3], %s1149_s10 }
  0x36   : > { %p883_p0 = pneg %p1158_p11 }
  0x38   : > { %s1156_s7 = scalar_lea.hbm %s1324_s0, %s654_s29  ;;  %s886_s29 = scalar_lea.hbm %s1324_s0, 1024 }
  0x39   : > { %s881_s17 = scalar_lea.hbm %s1156_s7, 512  ;;  %p887_p7 = scmp.lt.u32.totalorder %s1156_s7, %s1324_s0 }
  0x3a   : > { %p882_p13 = scmp.ne.s32.totalorder %s1156_s7, %s881_s17  ;;  %p888_p9 = scmp.lt.u32.totalorder %s886_s29, %s881_s17 }
  0x3b   : > { %p890_p2 = scmp.lt.u32.totalorder %s881_s17, %s1156_s7 }
  0x3c   : > { %p884_p3 = pnand %p883_p0, %p882_p13  ;;  %p889_p1 = por %p888_p9, %p887_p7 }
  0x3e   : > { %p885_p5 = pneg %p884_p3  ;;  %p891_p4 = por %p890_p2, %p889_p1 }
  0x40   : > { %p892_p6 = pnand %p891_p4, %p885_p5 }
  0x42   : > { %895 = shalt.err (!%p892_p6)
}
  0x43   : > { %s896_s12 = scalar_lea.vmem %s1162_s13, 512  ;;  %s1020_s6 = smov [#allocation2]  }
  0x44   : > { %p897_p8 = scmp.ne.s32.totalorder %s1162_s13, %s896_s12  ;;  %s901_s23 = sshll.u32 %s1020_s6, 4  ;;  %s902_s23 = int_to_ptr.vmem [resolvable:$false] %s901_s23 }
  0x45   : > { %s903_s27 = scalar_lea.vmem %s902_s23, 1024  ;;  %p904_p3 = scmp.lt.s32.totalorder %s1162_s13, %s902_s23 }
  0x46   : > { %p899_p10 = pnand %p897_p8, %p883_p0  ;;  %p905_p7 = scmp.lt.s32.totalorder %s903_s27, %s896_s12 }
  0x48   : > { %p900_p13 = pneg %p899_p10  ;;  %p906_p9 = por %p905_p7, %p904_p3 }
  0x4a   : > { %p907_p1 = pnand %p906_p9, %p900_p13 }
  0x4c   : > { %910 = shalt.err (!%p907_p1)
}
  0x4d   : > { %806 = dma.hbm_to_vmem [thread:$0]  (!%p1158_p11), %s1156_s7, 512, %s1162_s13, %s203_s16  }
  0x4e   : > { %s641_s17 = sshll.u32 %s1149_s10, 3  ;;  %s642_s29 = sshll.u32 %s1015_s21, 7 }
  0x4f   : > { %s1196_s6 = scalar_lea.hbm %s1308_s1, %s642_s29  ;;  %s225_s12 = scalar_lea.vmem [#allocation5], %s641_s17 }
  0x50   : > { %s232_s23 = sshll.u32 %s225_s12, 4  ;;  %s222_s27 = scalar_lea.sflag [#allocation6], %s221_s15  ;;  %s233_s23 = int_to_ptr.vmem [resolvable:$true] %s232_s23 }
  0x51   : > { %s911_s0 = scalar_lea.hbm %s1196_s6, 128  ;;  %s916_s13 = scalar_lea.hbm %s1308_s1, 256 }
  0x52   : > { %p912_p5 = scmp.ne.s32.totalorder %s1196_s6, %s911_s0  ;;  %p917_p6 = scmp.lt.u32.totalorder %s1196_s6, %s1308_s1 }
  0x53   : > { %p918_p8 = scmp.lt.u32.totalorder %s916_s13, %s911_s0  ;;  %p920_p13 = scmp.lt.u32.totalorder %s911_s0, %s1196_s6 }
  0x54   : > { %p914_p2 = pnand %p912_p5, %p883_p0 }
  0x55   : > { %p919_p10 = por %p918_p8, %p917_p6 }
  0x56   : > { %p915_p4 = pneg %p914_p2 }
  0x57   : > { %p921_p3 = por %p920_p13, %p919_p10 }
  0x59   : > { %p922_p7 = pnand %p921_p3, %p915_p4 }
  0x5b   : > { %925 = shalt.err (!%p922_p7)
}
  0x5c   : > { %s926_s15 = scalar_lea.vmem %s233_s23, 128  ;;  %s1021_s17 = smov [#allocation5]  }
  0x5d   : > { %p927_p9 = scmp.ne.s32.totalorder %s233_s23, %s926_s15  ;;  %s931_s11 = sshll.u32 %s1021_s17, 4  ;;  %s932_s11 = int_to_ptr.vmem [resolvable:$false] %s931_s11 }
  0x5e   : > { %s933_s28 = scalar_lea.vmem %s932_s11, 256  ;;  %p934_p2 = scmp.lt.s32.totalorder %s233_s23, %s932_s11 }
  0x5f   : > { %p929_p1 = pnand %p927_p9, %p883_p0  ;;  %p935_p12 = scmp.lt.s32.totalorder %s933_s28, %s926_s15 }
  0x61   : > { %p930_p5 = pneg %p929_p1  ;;  %p936_p6 = por %p935_p12, %p934_p2 }
  0x63   : > { %p937_p8 = pnand %p936_p6, %p930_p5 }
  0x65   : > { %940 = shalt.err (!%p937_p8)
}
  0x66   : > { %809 = dma.hbm_to_vmem [thread:$0]  (!%p1158_p11), %s1196_s6, 128, %s233_s23, %s222_s27  }
  0x67   : > { %p1326_p4 = scmp.ne.s32.totalorder %s1320_s26, 0 }
  0x68   : > { %s1222_s0 = sand.u32 (!%p1326_p4), 1, %s1007_s19   ;;  %p1327_p12 = scmp.ne.s32.totalorder (!%p1326_p4), %s1318_s24, 0 }
  0x69   : > { %241 = sbr.rel (%p1326_p4) target bundleno = 391 (0x187), region = 40  ;;  %s644_s12 = sshll.u32 (!%p1326_p4), %s1222_s0, 5 }
  0x6a   : > { %s244_s10 = scalar_lea.sflag (!%p1326_p4), [#allocation3], %s1222_s0  ;;  %s1226_s7 = scalar_lea.vmem (!%p1326_p4), [#allocation2], %s644_s12 }
  0x70   : > { %986 = dma.done.wait (%p1327_p12), %s244_s10, 512  }
  0x71   : > { %988 = vsyncadd (%p1327_p12), %s244_s10, 4294966784  ;;  %s252_s26 = sand.u32 1, %s1074_s22   ;;  %s645_s14 = sshll.u32 %s1222_s0, 3 }
  0x72   : > { %s253_s6 = scalar_lea.sflag [#allocation6], %s252_s26  ;;  %s1236_s23 = scalar_lea.vmem [#allocation5], %s645_s14 }
  0x73   : > { %990 = dma.done.wait (%p1327_p12), %s253_s6, 128  }
  0x74   : > { %992 = vsyncadd (%p1327_p12), %s253_s6, 4294967168  ;;  %p1328_p11 = scmp.eq.s32.totalorder %s1074_s22, 0 }
  0x76   : > { %994 = dma.done.wait (%p1328_p11), [#allocation6], 8192   ;;  %p1329_p0 = pmov %p1328_p11 }
  0x77   : > { %v312_v0 = vld [vmem:[#allocation7 + $0x80] sm:$0xff]  ;;  %v313_v1 = vld [vmem:[#allocation7 + $0x88] sm:$0xff]  ;;  %v314_v11 = vld [vmem:[#allocation7 + $0x90] sm:$0xff]  ;;  %s651_s29 = sshll.u32 %s1074_s22, 7  ;;  %s291_s15 = scalar_lea.vmem [#allocation8], %s645_s14 }
  0x78   : > { %996 = vsyncadd (%p1329_p0), [#allocation6], 4294959104  ;;  %v296_v2 = vld [vmem:[#allocation7] sm:$0xff]  ;;  %v725_v3 = vpack.c.bf16 %v313_v1, %v312_v0  ;;  %v297_v4 = vld [vmem:[#allocation7 + $0x8] sm:$0xff]  ;;  %s532_s17 = sshll.u32 %s291_s15, 4  ;;  %s1263_s12 = scalar_lea.hbm %s1312_s5, %s651_s29  ;;  %s1265_s17 = int_to_ptr.vmem [resolvable:$true] %s532_s17 }
  0x79   : > { %v344_v5 = vld [vmem:[#allocation7 + $0x180] sm:$0xff]  ;;  %v345_v6 = vld [vmem:[#allocation7 + $0x188] sm:$0xff]  ;;  %v727_v7 = vpack.c.bf16 %v297_v4, %v296_v2  ;;  %v315_v13 = vld [vmem:[#allocation7 + $0x98] sm:$0xff]  ;;  %s519_s10 = scalar_lea.sflag [#allocation4], %s1222_s0  ;;  %p1330_p13 = scmp.ne.s32.totalorder %s1323_s9, 0 }
  0x7a   : > { %v757_v8 = vpack.c.bf16 %v345_v6, %v344_v5  ;;  %v328_v9 = vld [vmem:[#allocation7 + $0x100] sm:$0xff]  ;;  %v329_v10 = vld [vmem:[#allocation7 + $0x108] sm:$0xff]  ;;  %726 = vmatprep.subr.bf16.mxu0 %v725_v3  ;;  %v298_v14 = vld [vmem:[#allocation7 + $0x10] sm:$0xff]  ;;  %v729_v16 = vpack.c.bf16 %v315_v13, %v314_v11  ;;  %s1022_s22 = smov [#allocation8]  }
  0x7b   : > { %v759_v12 = vpack.c.bf16 %v329_v10, %v328_v9  ;;  %v299_v15 = vld [vmem:[#allocation7 + $0x18] sm:$0xff]  ;;  %728 = vmatpush3.bf16.msra.mxu0 %v727_v7  ;;  %v346_v18 = vld [vmem:[#allocation7 + $0x190] sm:$0xff]  ;;  %v316_v23 = vld [vmem:[#allocation7 + $0xa0] sm:$0xff]  ;;  %s945_s26 = sshll.u32 %s1022_s22, 4  ;;  %s946_s26 = int_to_ptr.vmem [resolvable:$false] %s945_s26 }
  0x7c   : > { %758 = vmatprep.subr.bf16.mxu1 %v757_v8  ;;  %v731_v17 = vpack.c.bf16 %v299_v15, %v298_v14  ;;  %v347_v19 = vld [vmem:[#allocation7 + $0x198] sm:$0xff]  ;;  %v330_v20 = vld [vmem:[#allocation7 + $0x110] sm:$0xff]  ;;  %v317_v24 = vld [vmem:[#allocation7 + $0xa8] sm:$0xff]  ;;  %730 = vmatprep.subr.bf16.mxu0 %v729_v16  ;;  %s947_s14 = scalar_lea.vmem %s946_s26, 256  ;;  %p948_p9 = scmp.lt.s32.totalorder %s1265_s17, %s946_s26 }
  0x7d   : > { %760 = vmatpush3.bf16.msra.mxu1 %v759_v12  ;;  %v761_v21 = vpack.c.bf16 %v347_v19, %v346_v18  ;;  %v331_v22 = vld [vmem:[#allocation7 + $0x118] sm:$0xff]  ;;  %v733_v26 = vpack.c.bf16 %v317_v24, %v316_v23  ;;  %v300_v27 = vld [vmem:[#allocation7 + $0x20] sm:$0xff]  ;;  %v301_v28 = vld [vmem:[#allocation7 + $0x28] sm:$0xff] }
  0x7e   : > { %v763_v25 = vpack.c.bf16 %v331_v22, %v330_v20  ;;  %v348_v29 = vld [vmem:[#allocation7 + $0x1a0] sm:$0xff]  ;;  %v349_v30 = vld [vmem:[#allocation7 + $0x1a8] sm:$0xff]  ;;  %v735_v33 = vpack.c.bf16 %v301_v28, %v300_v27  ;;  %v318_v35 = vld [vmem:[#allocation7 + $0xb0] sm:$0xff] }
  0x7f   : > { %762 = vmatprep.subr.bf16.mxu1 %v761_v21  ;;  %v332_v31 = vld [vmem:[#allocation7 + $0x120] sm:$0xff]  ;;  %v333_v32 = vld [vmem:[#allocation7 + $0x128] sm:$0xff]  ;;  %732 = vmatpush3.bf16.msra.mxu0 %v731_v17  ;;  %v765_v34 = vpack.c.bf16 %v349_v30, %v348_v29  ;;  %v319_v36 = vld [vmem:[#allocation7 + $0xb8] sm:$0xff] }
  0x80   : > { %v302_v37 = vld [vmem:[#allocation7 + $0x30] sm:$0xff]  ;;  %734 = vmatprep.subr.bf16.mxu0 %v733_v26  ;;  %v767_v38 = vpack.c.bf16 %v333_v32, %v332_v31  ;;  %v737_v39 = vpack.c.bf16 %v319_v36, %v318_v35  ;;  %v303_v40 = vld [vmem:[#allocation7 + $0x38] sm:$0xff]  ;;  %v320_v46 = vld [vmem:[#allocation7 + $0xc0] sm:$0xff] }
  0x81   : > { %764 = vmatpush3.bf16.msra.mxu1 %v763_v25  ;;  %v350_v41 = vld [vmem:[#allocation7 + $0x1b0] sm:$0xff]  ;;  %v351_v42 = vld [vmem:[#allocation7 + $0x1b8] sm:$0xff]  ;;  %v321_v47 = vld [vmem:[#allocation7 + $0xc8] sm:$0xff]  ;;  %v739_v48 = vpack.c.bf16 %v303_v40, %v302_v37 }
  0x82   : > { %766 = vmatprep.subr.bf16.mxu1 %v765_v34  ;;  %v769_v43 = vpack.c.bf16 %v351_v42, %v350_v41  ;;  %v334_v44 = vld [vmem:[#allocation7 + $0x130] sm:$0xff]  ;;  %v335_v45 = vld [vmem:[#allocation7 + $0x138] sm:$0xff]  ;;  %v352_v49 = vld [vmem:[#allocation7 + $0x1c0] sm:$0xff]  ;;  %v741_v52 = vpack.c.bf16 %v321_v47, %v320_v46 }
  0x83   : > { %736 = vmatpush3.bf16.msra.mxu0 %v735_v33  ;;  %v353_v50 = vld [vmem:[#allocation7 + $0x1c8] sm:$0xff]  ;;  %v771_v51 = vpack.c.bf16 %v335_v45, %v334_v44  ;;  %v304_v53 = vld [vmem:[#allocation7 + $0x40] sm:$0xff]  ;;  %v322_v58 = vld [vmem:[#allocation7 + $0xd0] sm:$0xff] }
  0x84   : > { %738 = vmatprep.subr.bf16.mxu0 %v737_v39  ;;  %v305_v54 = vld [vmem:[#allocation7 + $0x48] sm:$0xff]  ;;  %v336_v55 = vld [vmem:[#allocation7 + $0x140] sm:$0xff]  ;;  %v773_v56 = vpack.c.bf16 %v353_v50, %v352_v49  ;;  %v323_v59 = vld [vmem:[#allocation7 + $0xd8] sm:$0xff] }
  0x85   : > { %768 = vmatpush3.bf16.msra.mxu1 %v767_v38  ;;  %v337_v57 = vld [vmem:[#allocation7 + $0x148] sm:$0xff]  ;;  %v354_v60 = vld [vmem:[#allocation7 + $0x1d0] sm:$0xff]  ;;  %v355_v61 = vld [vmem:[#allocation7 + $0x1d8] sm:$0xff]  ;;  %v743_v62 = vpack.c.bf16 %v305_v54, %v304_v53  ;;  %v745_v0 = vpack.c.bf16 %v323_v59, %v322_v58 }
  0x86   : > { %770 = vmatprep.subr.bf16.mxu1 %v769_v43  ;;  %v775_v63 = vpack.c.bf16 %v337_v57, %v336_v55  ;;  %v306_v1 = vld [vmem:[#allocation7 + $0x50] sm:$0xff]  ;;  %v307_v2 = vld [vmem:[#allocation7 + $0x58] sm:$0xff]  ;;  %v777_v4 = vpack.c.bf16 %v355_v61, %v354_v60  ;;  %v324_v6 = vld [vmem:[#allocation7 + $0xe0] sm:$0xff] }
  0x87   : > { %740 = vmatpush3.bf16.msra.mxu0 %v739_v48  ;;  %v338_v3 = vld [vmem:[#allocation7 + $0x150] sm:$0xff]  ;;  %v339_v5 = vld [vmem:[#allocation7 + $0x158] sm:$0xff]  ;;  %v325_v7 = vld [vmem:[#allocation7 + $0xe8] sm:$0xff]  ;;  %v747_v10 = vpack.c.bf16 %v307_v2, %v306_v1 }
  0x88   : > { %742 = vmatprep.subr.bf16.mxu0 %v741_v52  ;;  %v356_v8 = vld [vmem:[#allocation7 + $0x1e0] sm:$0xff]  ;;  %v357_v9 = vld [vmem:[#allocation7 + $0x1e8] sm:$0xff]  ;;  %v779_v13 = vpack.c.bf16 %v339_v5, %v338_v3  ;;  %v749_v14 = vpack.c.bf16 %v325_v7, %v324_v6  ;;  %v293_v17 = vld [vmem:[%s1226_s7 + $0x8] sm:$0xff] }
  0x89   : > { %772 = vmatpush3.bf16.msra.mxu1 %v771_v51  ;;  %v308_v11 = vld [vmem:[#allocation7 + $0x60] sm:$0xff]  ;;  %v309_v12 = vld [vmem:[#allocation7 + $0x68] sm:$0xff]  ;;  %v781_v18 = vpack.c.bf16 %v357_v9, %v356_v8  ;;  %v326_v19 = vld [vmem:[#allocation7 + $0xf0] sm:$0xff]  ;;  %425 = vmatprep.mubr.f32.mxu0 %v293_v17 }
  0x8a   : > { %774 = vmatprep.subr.bf16.mxu1 %v773_v56  ;;  %v340_v15 = vld [vmem:[#allocation7 + $0x160] sm:$0xff]  ;;  %v341_v16 = vld [vmem:[#allocation7 + $0x168] sm:$0xff]  ;;  %v327_v20 = vld [vmem:[#allocation7 + $0xf8] sm:$0xff]  ;;  %v751_v24 = vpack.c.bf16 %v309_v12, %v308_v11 }
  0x8b   : > { %744 = vmatpush3.bf16.msra.mxu0 %v743_v62  ;;  %v295_v21 = vld [vmem:[%s1226_s7 + $0x18] sm:$0xff]  ;;  %v358_v22 = vld [vmem:[#allocation7 + $0x1f0] sm:$0xff]  ;;  %v359_v23 = vld [vmem:[#allocation7 + $0x1f8] sm:$0xff]  ;;  %v783_v25 = vpack.c.bf16 %v341_v16, %v340_v15  ;;  %v753_v26 = vpack.c.bf16 %v327_v20, %v326_v19 }
  0x8c   : > { %746 = vmatprep.subr.bf16.mxu0 %v745_v0  ;;  %495 = vmatprep.mubr.f32.mxu1 %v295_v21  ;;  %v310_v27 = vld [vmem:[#allocation7 + $0x70] sm:$0xff]  ;;  %v311_v28 = vld [vmem:[#allocation7 + $0x78] sm:$0xff]  ;;  %v785_v29 = vpack.c.bf16 %v359_v23, %v358_v22  ;;  %v294_v35 = vld [vmem:[%s1226_s7 + $0x10] sm:$0xff] }
  0x8d   : > { %776 = vmatpush3.bf16.msra.mxu1 %v775_v63  ;;  %v342_v30 = vld [vmem:[#allocation7 + $0x170] sm:$0xff]  ;;  %v343_v31 = vld [vmem:[#allocation7 + $0x178] sm:$0xff]  ;;  %v755_v32 = vpack.c.bf16 %v311_v28, %v310_v27 }
  0x8e   : > { %778 = vmatprep.subr.bf16.mxu1 %v777_v4  ;;  %v787_v33 = vpack.c.bf16 %v343_v31, %v342_v30  ;;  %v292_v34 = vld [vmem:[%s1226_s7] sm:$0xff]  ;;  %s941_s7 = scalar_lea.vmem %s1265_s17, 128 }
  0x8f   : > { %748 = vmatpush3.bf16.msra.mxu0 %v747_v10  ;;  %v360_v37 = vld [vmem:[%s1236_s23] sm:$0xff]  ;;  %p942_p10 = scmp.ne.s32.totalorder %s1265_s17, %s941_s7  ;;  %p949_p1 = scmp.lt.s32.totalorder %s947_s14, %s941_s7 }
  0x90   : > { %750 = vmatprep.subr.bf16.mxu0 %v749_v14  ;;  %v648_v44 = vld [vmem:[%s1310_s3] ss:$0 sm:$0xff] }
  0x91   : > { %780 = vmatpush3.bf16.msra.mxu1 %v779_v13  ;;  %v649_v46 = vld [vmem:[%s1311_s4] ss:$0 sm:$0xff]  ;;  %p943_p3 = pnand %p942_p10, %p1330_p13  ;;  %p950_p5 = por %p949_p1, %p948_p9 }
  0x92   : > { %782 = vmatprep.subr.bf16.mxu1 %v781_v18 }
  0x93   : > { %752 = vmatpush3.bf16.msra.mxu0 %v751_v24  ;;  %p944_p7 = pneg %p943_p3 }
  0x94   : > { %754 = vmatprep.subr.bf16.mxu0 %v753_v26 }
  0x95   : > { %784 = vmatpush3.bf16.msra.mxu1 %v783_v25  ;;  %p951_p2 = pnand %p950_p5, %p944_p7 }
  0x96   : > { %786 = vmatprep.subr.bf16.mxu1 %v785_v29 }
  0x97   : > { %756 = vmatpush3.bf16.msra.mxu0 %v755_v32 }
  0x99   : > { %788 = vmatpush3.bf16.msra.mxu1 %v787_v33 }
  0x9a   : > { %426 = vmatmul.mubr.f32.vlgmr.msra.gmra.mrb[0].mxu0 %v292_v34 }
  0x9c   : > { %496 = vmatmul.mubr.f32.vlgmr.msra.gmra.mrb[0].mxu1 %v294_v35 }
 0x16d   : > { %v687_v36 = vpop.f32.mrb[0].mxu0 }
 0x16e   : > { %v688_v38 = vpop.f32.mrb[1].mxu0 }
 0x16f   : > { %v722_v39 = vpop.f32.mrb[0].mxu1  ;;  %v689_v40 = vadd.f32 %v688_v38, %v687_v36 }
 0x170   : > { %v723_v41 = vpop.f32.mrb[1].mxu1 }
 0x171   : > { %v724_v42 = vadd.f32 %v723_v41, %v722_v39  ;;  %v428_v43 = vadd.f32 %v689_v40, %v360_v37 }
 0x173   : > { %v498_v45 = vadd.f32 %v724_v42, %v428_v43 }
 0x175   : > { %v508_v47 = vmul.f32 %v648_v44, %v498_v45 }
 0x177   : > { %v516_v48 = vadd.f32 %v649_v46, %v508_v47 }
 0x179   : > { %517 = vst [vmem:[%s291_s15] sm:$0xff] %v516_v48 }
 0x17a   : > { %954 = shalt.err (!%p951_p2)
}
 0x17b   : > { %s955_s0 = scalar_lea.hbm %s1263_s12, 128  ;;  %s959_s24 = scalar_lea.hbm %s1312_s5, 256 }
 0x17c   : > { %p956_p6 = scmp.ne.s32.totalorder %s1263_s12, %s955_s0  ;;  %p960_p12 = scmp.lt.u32.totalorder %s1263_s12, %s1312_s5 }
 0x17d   : > { %p961_p11 = scmp.lt.u32.totalorder %s959_s24, %s955_s0  ;;  %p963_p10 = scmp.lt.u32.totalorder %s955_s0, %s1263_s12 }
 0x17e   : > { %p957_p8 = pnand %p956_p6, %p1330_p13 }
 0x17f   : > { %p962_p0 = por %p961_p11, %p960_p12 }
 0x180   : > { %p958_p4 = pneg %p957_p8 }
 0x181   : > { %p964_p3 = por %p963_p10, %p962_p0 }
 0x183   : > { %p965_p7 = pnand %p964_p3, %p958_p4 }
 0x185   : > { %968 = shalt.err (!%p965_p7)
}
 0x186   : > { %797 = dma.vmem_to_hbm [thread:$0]  (%p1330_p13), %s1265_s17, 128, %s1263_s12, %s519_s10  }
 0x187 PF: > { %s544_s16 = sand.u32 1, %s1003_s18   ;;  %p1331_p9 = scmp.ne.s32.totalorder %s1319_s25, 0 }
 0x188   : > { %p1332_p1 = scmp.ge.s32.totalorder %s1015_s21, 2  ;;  %s545_s29 = scalar_lea.sflag [#allocation4], %s544_s16 }
 0x18a   : > { %p811_p5 = pnand %p1332_p1, %p1331_p9 }
 0x18c   : > { %998 = dma.done.wait (!%p811_p5), %s545_s29, 128  }
 0x18d   : > { %1000 = vsyncadd (!%p811_p5), %s545_s29, 4294967168  ;;  %p21_p2 = scmp.ge.s32.totalorder %s1109_s30, 4   ;;  %s1333_s18 = smov %s1007_s19 }
 0x18e   : > { %s1334_s19 = smov %s1011_s20  ;;  %s1335_s20 = smov %s1140_s8 }
 0x18f   : > { %s1336_s21 = smov %s1109_s30  ;;  %23 = sbr.rel (!%p21_p2) target bundleno = 9 (0x9), region = 102 }
 0x196   :  { %550 = vsyncpa [#allocation3], 1 }
 0x197   :  { %552 = vsyncpa [#allocation3 + $0x1], 1 }
 0x198   :  { %553 = vsyncpa [#allocation6], 1 }
 0x199   :  { %555 = vsyncpa [#allocation6 + $0x1], 1 }
 0x19a   :  { %556 = vsyncpa [#allocation4], 1 }
 0x19b   :  { %558 = vsyncpa [#allocation4 + $0x1], 1 }

</bundles_post_ra>
